<compile_context>
chip_gen: v7x
topology: tpu7x:2x2x1
jax: 0.10.0
libtpu: 0.0.40
codegen_flags: <defaults>
</compile_context>

<pallas_src>
import jax
import jax.numpy as jnp
from jax.experimental import pallas as pl
from jax.experimental.pallas import tpu as pltpu


def lm_head_kernel(x_ref, wt_ref, bt_ref, gamma_ref, beta_ref, wd_ref, bd_ref,
                   out_ref, h_ref):
    """Fused BertLMPredictionHead, tiled over (row-tile i, vocab-tile j).

    The transform (dense + gelu + LayerNorm) is evaluated only on the first
    vocab tile of each row tile and cached in the VMEM scratch `h_ref` (bf16),
    then every vocab tile does one MXU matmul against its decoder-weight slice.
    """

    @pl.when(pl.program_id(1) == 0)
    def _compute_transform():
        x = x_ref[...].astype(jnp.bfloat16)                          # (tm, H)
        # transform dense (bf16 x bf16 -> f32 accumulate)
        h = jnp.dot(x, wt_ref[...], preferred_element_type=jnp.float32)
        h = h + bt_ref[...].astype(jnp.float32)

        # exact (erf-based) gelu, matching torch.nn.functional.gelu default
        inv_sqrt2 = jnp.float32(0.7071067811865476)
        h = 0.5 * h * (1.0 + jax.lax.erf(h * inv_sqrt2))

        # LayerNorm over hidden dim, eps = 1e-12 (BERT default), f32 math
        mean = jnp.mean(h, axis=-1, keepdims=True)
        var = jnp.mean((h - mean) * (h - mean), axis=-1, keepdims=True)
        h = (h - mean) * jax.lax.rsqrt(var + 1e-12)
        h = h * gamma_ref[...].astype(jnp.float32) + beta_ref[...].astype(jnp.float32)

        h_ref[...] = h.astype(jnp.bfloat16)                          # cache for all j

    # decoder slice: (tm, H) @ (H, tn) + (1, tn)
    logits = jnp.dot(h_ref[...], wd_ref[...], preferred_element_type=jnp.float32)
    out_ref[...] = (logits + bd_ref[...].astype(jnp.float32)).astype(out_ref.dtype)


def seq_rel_kernel(x_ref, w_ref, b_ref, out_ref):
    """seq_relationship: Linear(H, num_seq_relations). Tiny; fully resident."""
    x = x_ref[...].astype(jnp.float32)
    out_ref[...] = (jnp.dot(x, w_ref[...], preferred_element_type=jnp.float32)
                    + b_ref[...]).astype(out_ref.dtype)


def _pick_tiles(M, V):
    """Tile sizes that fit comfortably in the default scoped VMEM on all of
    v5e / v6e / v7x (double-buffered), while honoring the (8, 128) constraint
    (a tile equal to the full extent is always legal for toy shapes)."""
    tm = 256 if M > 256 else M          # rows of B*S
    tn = 1024 if V > 1024 else V        # vocab columns
    return tm, tn


def bert_pretraining_heads(sequence_output, pooled_output, params,
                           *, logits_dtype=None):
    """Returns (prediction_scores (B,S,V), seq_relationship_score (B,num_rel))."""
    B, S, H = sequence_output.shape
    V = params["decoder_w"].shape[1]
    num_rel = params["seq_rel_w"].shape[1]
    M = B * S
    out_dtype = sequence_output.dtype if logits_dtype is None else logits_dtype

    x2d = sequence_output.reshape(M, H)

    # bf16 MXU operands (f32 accumulation inside the kernel).
    wt_bf16 = params["transform_w"].astype(jnp.bfloat16)
    wd_bf16 = params["decoder_w"].astype(jnp.bfloat16)

    tm, tn = _pick_tiles(M, V)
    grid = (pl.cdiv(M, tm), pl.cdiv(V, tn))

    itemsize_out = jnp.dtype(out_dtype).itemsize
    cost = pl.CostEstimate(
        flops=2 * M * H * (H + V),
        transcendentals=M * H,                       # erf in gelu
        bytes_accessed=(x2d.size * x2d.dtype.itemsize
                        + wt_bf16.size * 2 + wd_bf16.size * 2
                        + M * V * itemsize_out),
    )

    prediction_scores = pl.pallas_call(
        lm_head_kernel,
        out_shape=jax.ShapeDtypeStruct((M, V), out_dtype),
        grid_spec=pltpu.PrefetchScalarGridSpec(
            num_scalar_prefetch=0,
            grid=grid,
            in_specs=[
                pl.BlockSpec((tm, H), lambda i, j: (i, 0)),   # x rows (not re-DMAed over j)
                pl.BlockSpec((H, H), lambda i, j: (0, 0)),    # transform_w (resident)
                pl.BlockSpec((1, H), lambda i, j: (0, 0)),    # transform_b
                pl.BlockSpec((1, H), lambda i, j: (0, 0)),    # ln gamma
                pl.BlockSpec((1, H), lambda i, j: (0, 0)),    # ln beta
                pl.BlockSpec((H, tn), lambda i, j: (0, j)),   # decoder_w vocab slice
                pl.BlockSpec((1, tn), lambda i, j: (0, j)),   # decoder_b vocab slice
            ],
            out_specs=pl.BlockSpec((tm, tn), lambda i, j: (i, j)),
            scratch_shapes=[pltpu.VMEM((tm, H), jnp.bfloat16)],
        ),
        compiler_params=pltpu.CompilerParams(
            dimension_semantics=("parallel", "arbitrary")),
        cost_estimate=cost,
    )(x2d, wt_bf16, params["transform_b"],
      params["ln_gamma"], params["ln_beta"],
      wd_bf16, params["decoder_b"])

    # seq_relationship: microscopic (B x H x num_rel) -> single resident call.
    vmem = pl.BlockSpec(memory_space=pltpu.MemorySpace.VMEM)
    seq_relationship_score = pl.pallas_call(
        seq_rel_kernel,
        out_shape=jax.ShapeDtypeStruct((B, num_rel), jnp.float32),
        in_specs=[vmem] * 3,
        out_specs=vmem,
    )(pooled_output, params["seq_rel_w"], params["seq_rel_b"])

    return prediction_scores.reshape(B, S, V), seq_relationship_score


def init_params(key, hidden_size, vocab_size, num_seq_relations):
    """Deterministic synthetic parameters. Weights stored as (in, out)."""
    ks = jax.random.split(key, 6)
    scale = 0.02
    return {
        "transform_w": scale * jax.random.normal(ks[0], (hidden_size, hidden_size), jnp.float32),
        "transform_b": jnp.zeros((1, hidden_size), jnp.float32),
        "ln_gamma":    jnp.ones((1, hidden_size), jnp.float32),
        "ln_beta":     jnp.zeros((1, hidden_size), jnp.float32),
        "decoder_w":   scale * jax.random.normal(ks[1], (hidden_size, vocab_size), jnp.float32),
        "decoder_b":   jnp.zeros((1, vocab_size), jnp.float32),
        "seq_rel_w":   scale * jax.random.normal(ks[2], (hidden_size, num_seq_relations), jnp.float32),
        "seq_rel_b":   jnp.zeros((1, num_seq_relations), jnp.float32),
    }


def _reference(sequence_output, pooled_output, params):
    """Pure-JAX f32 reference of the PyTorch forward for sanity checking."""
    B, S, H = sequence_output.shape
    x = sequence_output.reshape(B * S, H)
    h = x @ params["transform_w"] + params["transform_b"]
    h = 0.5 * h * (1.0 + jax.lax.erf(h * 0.7071067811865476))
    mean = jnp.mean(h, axis=-1, keepdims=True)
    var = jnp.mean((h - mean) ** 2, axis=-1, keepdims=True)
    h = (h - mean) * jax.lax.rsqrt(var + 1e-12)
    h = h * params["ln_gamma"] + params["ln_beta"]
    pred = (h @ params["decoder_w"] + params["decoder_b"]).reshape(B, S, -1)
    rel = pooled_output @ params["seq_rel_w"] + params["seq_rel_b"]
    return pred, rel


if __name__ == "__main__":
    B, S, H, V, NUM_REL = 2, 8, 32, 128, 2

    key = jax.random.PRNGKey(0)
    k_seq, k_pool, k_params = jax.random.split(key, 3)

    sequence_output = jax.random.normal(k_seq, (B, S, H), jnp.float32)
    pooled_output = jax.random.normal(k_pool, (B, H), jnp.float32)
    params = init_params(k_params, H, V, NUM_REL)

    pred_scores, seq_rel_scores = jax.jit(bert_pretraining_heads)(
        sequence_output, pooled_output, params)
    jax.block_until_ready((pred_scores, seq_rel_scores))

    assert pred_scores.shape == (B, S, V)
    assert seq_rel_scores.shape == (B, NUM_REL)

    ref_pred, ref_rel = _reference(sequence_output, pooled_output, params)
    # bf16 MXU operands (f32 accumulate) -> loose tolerance vs f32 reference.
    assert jnp.allclose(pred_scores, ref_pred, rtol=3e-2, atol=3e-2)
    assert jnp.allclose(seq_rel_scores, ref_rel, rtol=1e-4, atol=1e-4)

    print("KERNEL_OK")
</pallas_src>

<mosaic_0001>
module attributes {stable_mosaic.version = 11 : i64} {
  func.func @lm_head_kernel(%arg0: i32, %arg1: i32, %arg2: memref<16x32xf32, #tpu.memory_space<vmem>>, %arg3: memref<32x32xbf16, #tpu.memory_space<vmem>>, %arg4: memref<1x32xf32, #tpu.memory_space<vmem>>, %arg5: memref<1x32xf32, #tpu.memory_space<vmem>>, %arg6: memref<1x32xf32, #tpu.memory_space<vmem>>, %arg7: memref<32x128xbf16, #tpu.memory_space<vmem>>, %arg8: memref<1x128xf32, #tpu.memory_space<vmem>>, %arg9: memref<16x128xf32, #tpu.memory_space<vmem>>, %arg10: memref<16x32xbf16, #tpu.memory_space<vmem>>) attributes {dimension_semantics = [#tpu.dimension_semantics<parallel>, #tpu.dimension_semantics<arbitrary>], iteration_bounds = array<i64: 1, 1>, scalar_prefetch = 0 : i64, scratch_operands = 1 : i64, tpu.core_type = #tpu.core_type<tc>, window_params = [{transform_indices = @transform_0, window_bounds = array<i64: 16, 32>}, {pipeline_mode = #tpu.pipeline_mode<synchronous>, transform_indices = @transform_1, window_bounds = array<i64: 32, 32>}, {pipeline_mode = #tpu.pipeline_mode<synchronous>, transform_indices = @transform_2, window_bounds = array<i64: 1, 32>}, {pipeline_mode = #tpu.pipeline_mode<synchronous>, transform_indices = @transform_3, window_bounds = array<i64: 1, 32>}, {pipeline_mode = #tpu.pipeline_mode<synchronous>, transform_indices = @transform_4, window_bounds = array<i64: 1, 32>}, {transform_indices = @transform_5, window_bounds = array<i64: 32, 128>}, {transform_indices = @transform_6, window_bounds = array<i64: 1, 128>}, {transform_indices = @transform_7, window_bounds = array<i64: 16, 128>}]} {
    %c0_i32 = arith.constant 0 : i32
    %0 = arith.cmpi eq, %arg1, %c0_i32 : i32
    %1 = arith.extui %0 : i1 to i32
    %c0_i32_0 = arith.constant 0 : i32
    %2 = arith.cmpi ne, %1, %c0_i32_0 : i32
    scf.if %2 {
      %c0_8 = arith.constant 0 : index
      %c0_9 = arith.constant 0 : index
      %10 = vector.load %arg2[%c0_8, %c0_9] : memref<16x32xf32, #tpu.memory_space<vmem>>, vector<16x32xf32>
      %11 = arith.truncf %10 : vector<16x32xf32> to vector<16x32xbf16>
      %c0_10 = arith.constant 0 : index
      %c0_11 = arith.constant 0 : index
      %12 = vector.load %arg3[%c0_10, %c0_11] : memref<32x32xbf16, #tpu.memory_space<vmem>>, vector<32x32xbf16>
      %cst_12 = arith.constant dense<0.000000e+00> : vector<16x32xf32>
      %13 = tpu.matmul %11, %12, %cst_12 {dimension_numbers = #tpu.dot_dimension_numbers<[1], [0], [0], [1], [0, 0, 1, 1], [], []>} : vector<16x32xbf16>, vector<32x32xbf16>, vector<16x32xf32> -> vector<16x32xf32>
      %c0_13 = arith.constant 0 : index
      %c0_14 = arith.constant 0 : index
      %14 = vector.load %arg4[%c0_13, %c0_14] : memref<1x32xf32, #tpu.memory_space<vmem>>, vector<1x32xf32>
      %15 = vector.broadcast %14 : vector<1x32xf32> to vector<16x32xf32>
      %16 = arith.addf %13, %15 : vector<16x32xf32>
      %cst_15 = arith.constant 5.000000e-01 : f32
      %17 = vector.broadcast %cst_15 : f32 to vector<16x32xf32>
      %18 = arith.mulf %17, %16 : vector<16x32xf32>
      %cst_16 = arith.constant 0.707106769 : f32
      %19 = vector.broadcast %cst_16 : f32 to vector<16x32xf32>
      %20 = arith.mulf %16, %19 : vector<16x32xf32>
      %21 = math.erf %20 : vector<16x32xf32>
      %cst_17 = arith.constant 1.000000e+00 : f32
      %22 = vector.broadcast %cst_17 : f32 to vector<16x32xf32>
      %23 = arith.addf %22, %21 : vector<16x32xf32>
      %24 = arith.mulf %18, %23 : vector<16x32xf32>
      %cst_18 = arith.constant dense<0.000000e+00> : vector<16xf32>
      %25 = vector.multi_reduction <add>, %24, %cst_18 [1] : vector<16x32xf32> to vector<16xf32>
      %26 = vector.shape_cast %25 : vector<16xf32> to vector<16x1xf32>
      %cst_19 = arith.constant 3.200000e+01 : f32
      %27 = vector.broadcast %cst_19 : f32 to vector<16x1xf32>
      %28 = arith.divf %26, %27 : vector<16x1xf32>
      %29 = vector.broadcast %28 : vector<16x1xf32> to vector<16x32xf32>
      %30 = arith.subf %24, %29 : vector<16x32xf32>
      %31 = vector.broadcast %28 : vector<16x1xf32> to vector<16x32xf32>
      %32 = arith.subf %24, %31 : vector<16x32xf32>
      %33 = arith.mulf %30, %32 : vector<16x32xf32>
      %cst_20 = arith.constant dense<0.000000e+00> : vector<16xf32>
      %34 = vector.multi_reduction <add>, %33, %cst_20 [1] : vector<16x32xf32> to vector<16xf32>
      %35 = vector.shape_cast %34 : vector<16xf32> to vector<16x1xf32>
      %cst_21 = arith.constant 3.200000e+01 : f32
      %36 = vector.broadcast %cst_21 : f32 to vector<16x1xf32>
      %37 = arith.divf %35, %36 : vector<16x1xf32>
      %38 = vector.broadcast %28 : vector<16x1xf32> to vector<16x32xf32>
      %39 = arith.subf %24, %38 : vector<16x32xf32>
      %cst_22 = arith.constant 9.99999996E-13 : f32
      %40 = vector.broadcast %cst_22 : f32 to vector<16x1xf32>
      %41 = arith.addf %37, %40 : vector<16x1xf32>
      %42 = math.rsqrt %41 : vector<16x1xf32>
      %43 = vector.broadcast %42 : vector<16x1xf32> to vector<16x32xf32>
      %44 = arith.mulf %39, %43 : vector<16x32xf32>
      %c0_23 = arith.constant 0 : index
      %c0_24 = arith.constant 0 : index
      %45 = vector.load %arg5[%c0_23, %c0_24] : memref<1x32xf32, #tpu.memory_space<vmem>>, vector<1x32xf32>
      %46 = vector.broadcast %45 : vector<1x32xf32> to vector<16x32xf32>
      %47 = arith.mulf %44, %46 : vector<16x32xf32>
      %c0_25 = arith.constant 0 : index
      %c0_26 = arith.constant 0 : index
      %48 = vector.load %arg6[%c0_25, %c0_26] : memref<1x32xf32, #tpu.memory_space<vmem>>, vector<1x32xf32>
      %49 = vector.broadcast %48 : vector<1x32xf32> to vector<16x32xf32>
      %50 = arith.addf %47, %49 : vector<16x32xf32>
      %51 = arith.truncf %50 : vector<16x32xf32> to vector<16x32xbf16>
      %c0_27 = arith.constant 0 : index
      %c0_28 = arith.constant 0 : index
      %52 = vector.load %arg10[%c0_27, %c0_28] : memref<16x32xbf16, #tpu.memory_space<vmem>>, vector<16x32xbf16>
      tpu.vector_store %arg10[%c0_27, %c0_28], %51 {strides = array<i32>} : memref<16x32xbf16, #tpu.memory_space<vmem>>, vector<16x32xbf16>,
    } else {
    }
    %c0 = arith.constant 0 : index
    %c0_1 = arith.constant 0 : index
    %3 = vector.load %arg10[%c0, %c0_1] : memref<16x32xbf16, #tpu.memory_space<vmem>>, vector<16x32xbf16>
    %c0_2 = arith.constant 0 : index
    %c0_3 = arith.constant 0 : index
    %4 = vector.load %arg7[%c0_2, %c0_3] : memref<32x128xbf16, #tpu.memory_space<vmem>>, vector<32x128xbf16>
    %cst = arith.constant dense<0.000000e+00> : vector<16x128xf32>
    %5 = tpu.matmul %3, %4, %cst {dimension_numbers = #tpu.dot_dimension_numbers<[1], [0], [0], [1], [0, 0, 1, 1], [], []>} : vector<16x32xbf16>, vector<32x128xbf16>, vector<16x128xf32> -> vector<16x128xf32>
    %c0_4 = arith.constant 0 : index
    %c0_5 = arith.constant 0 : index
    %6 = vector.load %arg8[%c0_4, %c0_5] : memref<1x128xf32, #tpu.memory_space<vmem>>, vector<1x128xf32>
    %7 = vector.broadcast %6 : vector<1x128xf32> to vector<16x128xf32>
    %8 = arith.addf %5, %7 : vector<16x128xf32>
    %c0_6 = arith.constant 0 : index
    %c0_7 = arith.constant 0 : index
    %9 = vector.load %arg9[%c0_6, %c0_7] : memref<16x128xf32, #tpu.memory_space<vmem>>, vector<16x128xf32>
    tpu.vector_store %arg9[%c0_6, %c0_7], %8 {strides = array<i32>} : memref<16x128xf32, #tpu.memory_space<vmem>>, vector<16x128xf32>,
    return
  }
  func.func @transform_0(%arg0: i32, %arg1: i32) -> (i32, i32) {
    %c0_i32 = arith.constant 0 : i32
    %c0_i32_0 = arith.constant 0 : i32
    return %arg0, %c0_i32 : i32, i32
  }
  func.func @transform_1(%arg0: i32, %arg1: i32) -> (i32, i32) {
    %c0_i32 = arith.constant 0 : i32
    %c0_i32_0 = arith.constant 0 : i32
    %c0_i32_1 = arith.constant 0 : i32
    return %c0_i32, %c0_i32_0 : i32, i32
  }
  func.func @transform_2(%arg0: i32, %arg1: i32) -> (i32, i32) {
    %c0_i32 = arith.constant 0 : i32
    %c0_i32_0 = arith.constant 0 : i32
    %c0_i32_1 = arith.constant 0 : i32
    return %c0_i32, %c0_i32_0 : i32, i32
  }
  func.func @transform_3(%arg0: i32, %arg1: i32) -> (i32, i32) {
    %c0_i32 = arith.constant 0 : i32
    %c0_i32_0 = arith.constant 0 : i32
    %c0_i32_1 = arith.constant 0 : i32
    return %c0_i32, %c0_i32_0 : i32, i32
  }
  func.func @transform_4(%arg0: i32, %arg1: i32) -> (i32, i32) {
    %c0_i32 = arith.constant 0 : i32
    %c0_i32_0 = arith.constant 0 : i32
    %c0_i32_1 = arith.constant 0 : i32
    return %c0_i32, %c0_i32_0 : i32, i32
  }
  func.func @transform_5(%arg0: i32, %arg1: i32) -> (i32, i32) {
    %c0_i32 = arith.constant 0 : i32
    %c0_i32_0 = arith.constant 0 : i32
    return %c0_i32, %arg1 : i32, i32
  }
  func.func @transform_6(%arg0: i32, %arg1: i32) -> (i32, i32) {
    %c0_i32 = arith.constant 0 : i32
    %c0_i32_0 = arith.constant 0 : i32
    return %c0_i32, %arg1 : i32, i32
  }
  func.func @transform_7(%arg0: i32, %arg1: i32) -> (i32, i32) {
    %c0_i32 = arith.constant 0 : i32
    return %arg0, %arg1 : i32, i32
  }
}

module attributes {stable_mosaic.version = 11 : i64} {
  func.func @seq_rel_kernel(%arg0: memref<2x32xf32, #tpu.memory_space<vmem>>, %arg1: memref<32x2xf32, #tpu.memory_space<vmem>>, %arg2: memref<1x2xf32, #tpu.memory_space<vmem>>, %arg3: memref<2x2xf32, #tpu.memory_space<vmem>>) attributes {dimension_semantics = [], scalar_prefetch = 0 : i64, scratch_operands = 0 : i64, tpu.core_type = #tpu.core_type<tc>} {
    %c0 = arith.constant 0 : index
    %c0_0 = arith.constant 0 : index
    %0 = vector.load %arg0[%c0, %c0_0] : memref<2x32xf32, #tpu.memory_space<vmem>>, vector<2x32xf32>
    %c0_1 = arith.constant 0 : index
    %c0_2 = arith.constant 0 : index
    %1 = vector.load %arg1[%c0_1, %c0_2] : memref<32x2xf32, #tpu.memory_space<vmem>>, vector<32x2xf32>
    %cst = arith.constant dense<0.000000e+00> : vector<2x2xf32>
    %2 = tpu.matmul %0, %1, %cst {dimension_numbers = #tpu.dot_dimension_numbers<[1], [0], [0], [1], [0, 0, 1, 1], [], []>} : vector<2x32xf32>, vector<32x2xf32>, vector<2x2xf32> -> vector<2x2xf32>
    %c0_3 = arith.constant 0 : index
    %c0_4 = arith.constant 0 : index
    %3 = vector.load %arg2[%c0_3, %c0_4] : memref<1x2xf32, #tpu.memory_space<vmem>>, vector<1x2xf32>
    %4 = vector.broadcast %3 : vector<1x2xf32> to vector<2x2xf32>
    %5 = arith.addf %2, %4 : vector<2x2xf32>
    %c0_5 = arith.constant 0 : index
    %c0_6 = arith.constant 0 : index
    %6 = vector.load %arg3[%c0_5, %c0_6] : memref<2x2xf32, #tpu.memory_space<vmem>>, vector<2x2xf32>
    tpu.vector_store %arg3[%c0_5, %c0_6], %5 {strides = array<i32>} : memref<2x2xf32, #tpu.memory_space<vmem>>, vector<2x2xf32>,
    return
  }
}

</mosaic_0001>

<bundles_post_ra>
// kernel: bert_pretraining_heads.3
= control target key start
LH: loop header
LB: loop body
LE: loop exit
PB: predicated region body
PF: predicated region fallthrough
CT: control target
= control target key end

     0   :  { %v169_v3 = vmov 0.0|0.0   ;;  %vm170_vm0 = vmmov 0   ;;  %v171_v6 = vmov 0.0   ;;  %s223_s0 = inlined_call_operand.vmem [shape: f32[2,32], index: 0, kind: input, shape index: {}]   ;;  %s224_s1 = inlined_call_operand.vmem [shape: f32[32,2], index: 1, kind: input, shape index: {}]   ;;  %s225_s2 = inlined_call_operand.vmem [shape: f32[1,2], index: 2, kind: input, shape index: {}]   ;;  %s226_s3 = inlined_call_operand.hbm [shape: f32[2,2], index: 3, kind: output, shape index: {}]  }
   0x1   :  { %v16_v0 = vld [vmem:[%s224_s1] sm:$0xff]  ;;  %v17_v1 = vld [vmem:[%s224_s1 + $0x8] sm:$0xff]  ;;  %v18_v2 = vld [vmem:[%s224_s1 + $0x10] sm:$0xff]  ;;  %135 = vmatprep.subr.bf16.mxu0 %v169_v3  ;;  %132 = vmatprep.mubr.msk.f32.mxu0 %vm170_vm0, %v171_v6 }
   0x2   :  { %v136_v4 = vpack.c.bf16 %v17_v1, %v16_v0  ;;  %v19_v5 = vld [vmem:[%s224_s1 + $0x18] sm:$0xff] }
   0x3   :  { %8 = vsyncpa [#allocation3], 0  ;;  %v139_v7 = vpack.c.bf16 %v19_v5, %v18_v2  ;;  %v15_v8 = vld [vmem:[%s223_s0] sm:$0x3]  ;;  %vm27_vm1 = vcmask 261120   ;;  %s172_s24 = smov [#allocation2]  }
   0x4   :  { %137 = vmatpush3.bf16.msra.mxu0 %v136_v4  ;;  %v117_v9 = vld [vmem:[%s225_s2] ss:$0 sm:$0xff]  ;;  %s109_s1 = sshll.u32 %s172_s24, 4  ;;  %vm101_vm2 = vcmask 9216   ;;  %s110_s1 = int_to_ptr.vmem [resolvable:$true] %s109_s1 }
   0x5   :  { %138 = vmatprep.subr.bf16.mxu0 %v169_v3  ;;  %s145_s25 = scalar_lea.vmem %s110_s1, 32  ;;  %p150_p1 = scmp.lt.s32.totalorder %s110_s1, %s110_s1 }
   0x6   :  { %p146_p0 = scmp.ne.s32.totalorder %s110_s1, %s145_s25  ;;  %p151_p2 = scmp.lt.s32.totalorder %s145_s25, %s145_s25 }
   0x8   :  { %140 = vmatpush3.bf16.msra.mxu0 %v139_v7  ;;  %p152_p3 = por %p151_p2, %p150_p1 }
   0xa   :  { %p153_p4 = pnand %p152_p3, %p146_p0 }
   0xb   :  { %133 = vmatmul.mubr.msk.f32.vlgmr.msra.gmra.mrb[0].mxu0 %vm27_vm1, %v15_v8 }
  0xde   :  { %v97_v10 = vpop.f32.mrb[0].mxu0 }
  0xdf   :  { %v98_v11 = vadd.f32 %v117_v9, %v97_v10  ;;  %v134_v12 = vpop.f32.mrb[1].mxu0 }
  0xe1   :  { %102 = vst.msk [vmem:[#allocation2] sm:$0x3] %vm101_vm2, %v98_v11 }
  0xe2   :  { %156 = shalt.err (!%p153_p4)
}
  0xe3   :  { %s157_s27 = scalar_lea.hbm %s226_s3, 32 }
  0xe4   :  { %p158_p5 = scmp.ne.s32.totalorder %s226_s3, %s157_s27  ;;  %p161_p6 = scmp.lt.u32.totalorder %s157_s27, %s226_s3 }
  0xe6   :  { %p163_p7 = pnand %p161_p6, %p158_p5 }
  0xe8   :  { %166 = shalt.err (!%p163_p7)
}
  0xe9   :  { %112 = dma.vmem_to_hbm [thread:$0]  %s110_s1, 32, %s226_s3, [#allocation3]  }
  0xea   :  { %167 = dma.done.wait [#allocation3], 32  }
  0xeb   :  { %168 = vsyncadd [#allocation3], 4294967264 }
  0xec   :  { %116 = vsyncpa [#allocation3], 1 }

// kernel: bert_pretraining_heads.2
= control target key start
LH: loop header
LB: loop body
LE: loop exit
PB: predicated region body
PF: predicated region fallthrough
CT: control target
= control target key end

     0   :  { %v320_v1 = vmov 0.0   ;;  %vm321_vm0 = vmmov 0   ;;  %s414_s0 = inlined_call_operand.vmem [shape: f32[16,32], index: 0, kind: input, shape index: {}]   ;;  %s415_s1 = inlined_call_operand.vmem [shape: bf16[32,32], index: 1, kind: input, shape index: {}]   ;;  %s416_s2 = inlined_call_operand.vmem [shape: f32[1,32], index: 2, kind: input, shape index: {}]   ;;  %s417_s3 = inlined_call_operand.vmem [shape: f32[1,32], index: 3, kind: input, shape index: {}]   ;;  %s418_s4 = inlined_call_operand.vmem [shape: f32[1,32], index: 4, kind: input, shape index: {}]   ;;  %s419_s5 = inlined_call_operand.vmem [shape: bf16[32,128], index: 5, kind: input, shape index: {}]   ;;  %s420_s6 = inlined_call_operand.vmem [shape: f32[1,128], index: 6, kind: input, shape index: {}]   ;;  %s421_s7 = inlined_call_operand.hbm [shape: f32[16,128], index: 7, kind: output, shape index: {}]  }
   0x1   :  { %v284_v0 = vld [vmem:[%s415_s1] sm:$0xff]   ;;  %263 = vmatprep.subr.bf16.mxu0 %v320_v1  ;;  %271 = vmatprep.subr.bf16.mxu1 %v320_v1  ;;  %v285_v2 = vld [vmem:[%s415_s1 + $0x8] sm:$0xff]  }
   0x2   :  { %264 = vmatpush3.bf16.msra.mxu0 %v284_v0  ;;  %267 = vmatprep.mubr.msk.bf16.mxu0 %vm321_vm0, %v320_v1  ;;  %v32_v3 = vld [vmem:[%s414_s0] sm:$0xff]  ;;  %v33_v4 = vld [vmem:[%s414_s0 + $0x8] sm:$0xff] }
   0x3   :  { %265 = vmatprep.subr.bf16.mxu0 %v320_v1  ;;  %275 = vmatprep.mubr.msk.bf16.mxu1 %vm321_vm0, %v320_v1 }
   0x4   :  { %12 = vsyncpa [#allocation4], 0  ;;  %v34_v5 = vpack.c.bf16 %v33_v4, %v32_v3  ;;  %vm58_vm1 = vcmask 261120   ;;  %v247_v6 = vld [vmem:[%s416_s2] ss:$0 sm:$0xff]  ;;  %v287_v36 = vld [vmem:[%s419_s5 + $0x8] sm:$0xff]  }
   0x5   :  { %v286_v35 = vld [vmem:[%s419_s5] sm:$0xff]  }
   0x6   :  { %266 = vmatpush3.bf16.msra.mxu0 %v285_v2  ;;  %272 = vmatpush3.bf16.msra.mxu1 %v286_v35  ;;  %v251_v45 = vld [vmem:[%s417_s3] ss:$0 sm:$0xff]  ;;  %s322_s3 = smov [#allocation3]  }
   0x7   :  { %273 = vmatprep.subr.bf16.mxu1 %v320_v1  ;;  %v252_v49 = vld [vmem:[%s418_s4] ss:$0 sm:$0xff]  ;;  %s236_s17 = sshll.u32 %s322_s3, 4  ;;  %s237_s17 = int_to_ptr.vmem [resolvable:$true] %s236_s17 }
   0x8   :  { %v253_v55 = vld [vmem:[%s420_s6] ss:$0 sm:$0xff]  ;;  %s296_s4 = scalar_lea.vmem %s237_s17, 256  ;;  %p301_p1 = scmp.lt.s32.totalorder %s237_s17, %s237_s17 }
   0x9   :  { %268 = vmatmul.mubr.msk.bf16.vlgmr.msra.gmra.mrb[0].mxu0 %vm58_vm1, %v34_v5  ;;  %p297_p0 = scmp.ne.s32.totalorder %s237_s17, %s296_s4  ;;  %p302_p2 = scmp.lt.s32.totalorder %s296_s4, %s296_s4 }
   0xa   :  { %274 = vmatpush3.bf16.msra.mxu1 %v287_v36 }
   0xb   :  { %p303_p3 = por %p302_p2, %p301_p1 }
   0xd   :  { %p304_p4 = pnand %p303_p3, %p297_p0 }
  0xdc   :  { %v96_v7 = vpop.f32.mrb[0].mxu0 }
  0xdd   :  { %v97_v8 = vadd.f32 %v247_v6, %v96_v7  ;;  %v269_v9 = vpop.f32.mrb[1].mxu0 }
  0xde   :  { %v99_v10 = vpop.f32.mrb[2].mxu0 }
  0xdf   :  { %v105_v11 = vmul.f32 0.70710677, %v97_v8  ;;  %v100_v12 = vadd.f32 %v247_v6, %v99_v10  ;;  %v270_v13 = vpop.f32.mrb[3].mxu0  ;;  %v103_v16 = vmul.f32 0.5, %v97_v8 }
  0xe1   :  { %288 = verf.f32 %v105_v11  ;;  %v106_v14 = vmul.f32 0.70710677, %v100_v12  ;;  %v104_v19 = vmul.f32 0.5, %v100_v12 }
  0xe3   :  { %290 = verf.f32 %v106_v14 }
  0xeb   :  { %v289_v15 = vpop.eup %288 }
  0xec   :  { %v109_v17 = vadd.f32 1.0, %v289_v15 }
  0xed   :  { %v291_v18 = vpop.eup %290 }
  0xee   :  { %v111_v20 = vmul.f32 %v109_v17, %v103_v16  ;;  %v110_v21 = vadd.f32 1.0, %v291_v18 }
  0xf0   :  { %v113_v22 = vsel %vm58_vm1, %v111_v20, 0.0  ;;  %v112_v23 = vmul.f32 %v110_v21, %v104_v19 }
  0xf1   :  { %114 = vadd.xlane.f32.xlu0 %v113_v22 }
  0xf2   :  { %v116_v24 = vsel %vm58_vm1, %v112_v23, 0.0 }
  0xf5   :  { %117 = vadd.xlane.f32.xlu0 %v116_v24 }
 0x17e   :  { %v115_v25 = vpop.xlane.xlu0 %114 }
 0x17f   :  { %v120_v26 = vmul.f32 0.03125, %v115_v25 }
 0x181   :  { %v122_v27 = vsub.f32 %v111_v20, %v120_v26 }
 0x182   :  { %v118_v28 = vpop.xlane.xlu0 %117 }
 0x183   :  { %v121_v29 = vmul.f32 0.03125, %v118_v28  ;;  %v124_v30 = vmul.f32 %v122_v27, %v122_v27 }
 0x185   :  { %v123_v31 = vsub.f32 %v112_v23, %v121_v29  ;;  %v126_v32 = vsel %vm58_vm1, %v124_v30, 0.0 }
 0x186   :  { %127 = vadd.xlane.f32.xlu1 %v126_v32 }
 0x187   :  { %v125_v33 = vmul.f32 %v123_v31, %v123_v31 }
 0x189   :  { %v129_v34 = vsel %vm58_vm1, %v125_v33, 0.0 }
 0x18a   :  { %130 = vadd.xlane.f32.xlu1 %v129_v34 }
 0x213   :  { %v128_v37 = vpop.xlane.xlu1 %127 }
 0x214   :  { %v132_v38 = vmul.f32 0.03125, %v128_v37 }
 0x216   :  { %v134_v39 = vadd.f32 1e-12, %v132_v38 }
 0x217   :  { %v131_v40 = vpop.xlane.xlu1 %130 }
 0x218   :  { %292 = vrsqrt.f32 %v134_v39  ;;  %v133_v41 = vmul.f32 0.03125, %v131_v40 }
 0x21a   :  { %v135_v42 = vadd.f32 1e-12, %v133_v41 }
 0x21c   :  { %294 = vrsqrt.f32 %v135_v42 }
 0x222   :  { %v293_v43 = vpop.eup %292 }
 0x223   :  { %v138_v44 = vmul.f32 %v293_v43, %v122_v27 }
 0x225   :  { %v147_v47 = vmul.f32 %v251_v45, %v138_v44 }
 0x226   :  { %v295_v46 = vpop.eup %294 }
 0x227   :  { %v139_v48 = vmul.f32 %v295_v46, %v123_v31  ;;  %v156_v51 = vadd.f32 %v252_v49, %v147_v47 }
 0x229   :  { %v148_v50 = vmul.f32 %v251_v45, %v139_v48 }
 0x22b   :  { %v157_v52 = vadd.f32 %v252_v49, %v148_v50 }
 0x22d   :  { %v158_v53 = vpack.c.bf16 %v157_v52, %v156_v51 }
 0x22f   :  { %159 = vst.msk [vmem:[#allocation2] sm:$0xff] %vm58_vm1, %v158_v53 }
 0x236   :  { %v160_v54 = vld [vmem:[#allocation2] sm:$0xff] }
 0x237   :  { %276 = vmatmul.mubr.msk.bf16.vlgmr.msra.gmra.mrb[0].mxu1 %vm58_vm1, %v160_v54 }
 0x30a   :  { %v222_v56 = vpop.f32.mrb[0].mxu1 }
 0x30b   :  { %v223_v57 = vadd.f32 %v253_v55, %v222_v56  ;;  %v277_v58 = vpop.f32.mrb[1].mxu1 }
 0x30c   :  { %v225_v59 = vpop.f32.mrb[2].mxu1 }
 0x30d   :  { %229 = vst [vmem:[#allocation3] sm:$0xff] %v223_v57  ;;  %v226_v60 = vadd.f32 %v253_v55, %v225_v59  ;;  %v278_v61 = vpop.f32.mrb[3].mxu1 }
 0x30f   :  { %230 = vst [vmem:[#allocation3 + $0x8] sm:$0xff] %v226_v60 }
 0x310   :  { %307 = shalt.err (!%p304_p4)
}
 0x311   :  { %s308_s19 = scalar_lea.hbm %s421_s7, 256 }
 0x312   :  { %p309_p5 = scmp.ne.s32.totalorder %s421_s7, %s308_s19  ;;  %p312_p6 = scmp.lt.u32.totalorder %s308_s19, %s421_s7 }
 0x314   :  { %p314_p7 = pnand %p312_p6, %p309_p5 }
 0x316   :  { %317 = shalt.err (!%p314_p7)
}
 0x317   :  { %s323_s24 = smov 128   ;;  %s324_s25 = smov 8  }
 0x318   :  { %242 = dma.vmem_to_hbm [thread:$0]  %s237_s17, 256, %s421_s7, [#allocation4], %s323_s24, %s323_s24, %s324_s25  }
 0x319   :  { %318 = dma.done.wait [#allocation4], 256  }
 0x31a   :  { %319 = vsyncadd [#allocation4], 4294967040 }
 0x31b   :  { %246 = vsyncpa [#allocation4], 1 }

</bundles_post_ra>
